<compile_context>
chip_gen: v7x
topology: tpu7x:2x2x1
jax: 0.10.0
libtpu: 0.0.40
codegen_flags: <defaults>
</compile_context>

<pallas_src>
import functools

import jax
import jax.numpy as jnp
from jax.experimental import pallas as pl
from jax.experimental.pallas import tpu as pltpu

_LANE = 128
_TILE_ROWS = 4096          # (4096, 128) f32 = 2 MiB per input tile
_SMALL_LIMIT_ROWS = 4096   # whole-channel blocks when N*R fits one 2 MiB tile
_SPLIT_MIN_TILES = 8       # enable the 2-way core split only with >= 8 tiles


def _dice_small_kernel(pred_ref, targ_ref, inter_ref, union_ref):
    # Blocks: pred/targ (N, 1, R, 128); outputs (1, 1, 128).
    # One grid step per foreground channel -> write fresh partials, no init.
    p = pred_ref[...].astype(jnp.float32)
    t = targ_ref[...].astype(jnp.float32)
    inter_rows = jnp.sum(p * t, axis=(0, 1))                     # (R, 128)
    union_rows = jnp.sum(p, axis=(0, 1)) + jnp.sum(t, axis=(0, 1))
    inter_ref[...] = jnp.sum(inter_rows, axis=0, keepdims=True)[None]  # (1,1,128)
    union_ref[...] = jnp.sum(union_rows, axis=0, keepdims=True)[None]


def _dice_tile_kernel(pred_ref, targ_ref, inter_ref, union_ref, *,
                      tile_rows, total_rows, tiles_per_core):
    # Grid = (core-split [par], C-1 [par], N [arb], spatial tiles [arb]).
    core = pl.program_id(0)
    n = pl.program_id(2)
    s = pl.program_id(3)

    # First reduction step for this (core, channel): reset resident partials.
    @pl.when(jnp.logical_and(n == 0, s == 0))
    def _():
        inter_ref[...] = jnp.zeros_like(inter_ref)
        union_ref[...] = jnp.zeros_like(union_ref)

    p = pred_ref[...].astype(jnp.float32)   # (tile_rows, 128)
    t = targ_ref[...].astype(jnp.float32)

    # Rows of this tile that lie inside the real array.  <= 0 means this grid
    # step is the (clamped duplicate) filler tile of the 2-way core split.
    rows_left = total_rows - (core * tiles_per_core + s) * tile_rows

    @pl.when(rows_left >= tile_rows)
    def _():  # full tile: sublane reductions only, no masking
        inter_ref[...] += jnp.sum(p * t, axis=0, keepdims=True)
        union_ref[...] += (jnp.sum(p, axis=0, keepdims=True) +
                           jnp.sum(t, axis=0, keepdims=True))

    @pl.when(rows_left < tile_rows)
    def _():  # ragged / duplicate tile: mask invalid rows before reducing
        row = jax.lax.broadcasted_iota(jnp.int32, (tile_rows, 1), 0)
        keep = row < rows_left
        pm = jnp.where(keep, p, 0.0)
        tm = jnp.where(keep, t, 0.0)
        inter_ref[...] += jnp.sum(pm * tm, axis=0, keepdims=True)
        union_ref[...] += (jnp.sum(pm, axis=0, keepdims=True) +
                           jnp.sum(tm, axis=0, keepdims=True))


def dice_loss(pred, target, *, tile_rows=_TILE_ROWS,
              small_limit_rows=_SMALL_LIMIT_ROWS):
    """pred, target: (N, C, D, H, W) arrays -> scalar float32 soft Dice loss."""
    N, C, D, H, W = pred.shape
    if C <= 1:
        # PyTorch loop `range(1, C)` is empty.
        return jnp.float32(0.0)
    Cm1 = C - 1

    S = D * H * W
    R = (S + _LANE - 1) // _LANE          # rows of the (R, 128) spatial view
    S_pad = R * _LANE

    pred_f = pred.reshape(N, C, S)        # contiguous reshape: no HBM relayout
    targ_f = target.reshape(N, C, S)
    if S_pad != S:
        # Pad only to the next multiple of 128 (required for the (R, 128)
        # reshape); the padded zeros contribute nothing to either sum.
        pad = ((0, 0), (0, 0), (0, S_pad - S))
        pred_f = jnp.pad(pred_f, pad)
        targ_f = jnp.pad(targ_f, pad)
    pred_r = pred_f.reshape(N, C, R, _LANE)
    targ_r = targ_f.reshape(N, C, R, _LANE)

    itemsize = jnp.dtype(pred.dtype).itemsize
    cost = pl.CostEstimate(
        flops=3 * N * Cm1 * S,
        transcendentals=0,
        bytes_accessed=2 * N * Cm1 * S_pad * itemsize + 2 * Cm1 * _LANE * 4,
    )
    cparams = dict(vmem_limit_bytes=32 * 1024 * 1024)

    if N * R <= small_limit_rows:
        # ---------- small-volume path: one grid step per foreground channel.
        in_spec = pl.BlockSpec((N, 1, R, _LANE), lambda c: (0, c + 1, 0, 0))
        out_spec = pl.BlockSpec((1, 1, _LANE), lambda c: (c, 0, 0))
        inter_out, union_out = pl.pallas_call(
            _dice_small_kernel,
            out_shape=(jax.ShapeDtypeStruct((Cm1, 1, _LANE), jnp.float32),
                       jax.ShapeDtypeStruct((Cm1, 1, _LANE), jnp.float32)),
            grid_spec=pltpu.PrefetchScalarGridSpec(
                num_scalar_prefetch=0,
                grid=(Cm1,),
                in_specs=[in_spec, in_spec],
                out_specs=[out_spec, out_spec],
            ),
            compiler_params=pltpu.CompilerParams(
                dimension_semantics=("parallel",), **cparams),
            cost_estimate=cost,
        )(pred_r, targ_r)
        inter = jnp.sum(inter_out, axis=(1, 2))      # (C-1,)
        union = jnp.sum(union_out, axis=(1, 2))
    else:
        # ---------- large-volume path: streaming (TR, 128) tiles.
        tile_rows = max(8, (int(tile_rows) // 8) * 8)   # keep sublane-aligned
        TR = tile_rows if R >= tile_rows else R          # TR==R is always legal
        num_s = (R + TR - 1) // TR
        ncores = 2 if num_s >= _SPLIT_MIN_TILES else 1
        half = (num_s + ncores - 1) // ncores

        def in_map(core, c, n, s):
            # Channel 0 is never fetched; the clamp makes the (at most one)
            # filler step of the core split re-fetch the last real tile, whose
            # contribution is fully masked to zero in the kernel.
            return (n, c + 1, jnp.minimum(core * half + s, num_s - 1), 0)

        in_spec = pl.BlockSpec((None, None, TR, _LANE), in_map)
        out_spec = pl.BlockSpec((None, None, 1, _LANE),
                                lambda core, c, n, s: (core, c, 0, 0))

        kernel = functools.partial(_dice_tile_kernel, tile_rows=TR,
                                   total_rows=R, tiles_per_core=half)
        inter_out, union_out = pl.pallas_call(
            kernel,
            out_shape=(jax.ShapeDtypeStruct((ncores, Cm1, 1, _LANE), jnp.float32),
                       jax.ShapeDtypeStruct((ncores, Cm1, 1, _LANE), jnp.float32)),
            grid_spec=pltpu.PrefetchScalarGridSpec(
                num_scalar_prefetch=0,
                grid=(ncores, Cm1, N, half),
                in_specs=[in_spec, in_spec],
                out_specs=[out_spec, out_spec],
            ),
            compiler_params=pltpu.CompilerParams(
                dimension_semantics=("parallel", "parallel",
                                     "arbitrary", "arbitrary"),
                **cparams),
            cost_estimate=cost,
        )(pred_r, targ_r)
        inter = jnp.sum(inter_out, axis=(0, 2, 3))   # (C-1,)
        union = jnp.sum(union_out, axis=(0, 2, 3))

    smooth = jnp.float32(1.0)
    per_channel = jnp.float32(1.0) - (jnp.float32(2.0) * inter + smooth) / (union + smooth)
    return jnp.sum(per_channel) / jnp.float32(C)


def _dice_loss_ref(pred, target):
    C = pred.shape[1]
    smooth = 1.0
    loss = 0.0
    for i in range(1, C):
        inter = jnp.sum(pred[:, i] * target[:, i])
        union = jnp.sum(pred[:, i] + target[:, i])
        loss = loss + (1.0 - (2.0 * inter + smooth) / (union + smooth))
    return loss / C


if __name__ == "__main__":
    key = jax.random.PRNGKey(0)
    k1, k2, k3, k4 = jax.random.split(key, 4)

    # Case 1: small demo volume -> whole-channel (small) path.
    N, C, D, H, W = 2, 4, 8, 8, 8
    pred1 = jax.nn.softmax(jax.random.normal(k1, (N, C, D, H, W), jnp.float32), axis=1)
    targ1 = (jax.random.uniform(k2, (N, C, D, H, W), jnp.float32) > 0.5).astype(jnp.float32)
    out1 = jax.block_until_ready(dice_loss(pred1, targ1))
    ref1 = jax.block_until_ready(_dice_loss_ref(pred1, targ1))
    assert jnp.allclose(out1, ref1, rtol=1e-4, atol=1e-5), (out1, ref1)

    # Case 2: odd spatial size with a small forced tile so the streaming path,
    # the 128-pad, the ragged-tail mask and the 2-way core split (including its
    # clamped duplicate tile) are all exercised on small data.
    N2, C2, D2, H2, W2 = 2, 3, 2, 30, 139      # S = 8340, not a multiple of 128
    pred2 = jax.nn.softmax(jax.random.normal(k3, (N2, C2, D2, H2, W2), jnp.float32), axis=1)
    targ2 = (jax.random.uniform(k4, (N2, C2, D2, H2, W2), jnp.float32) > 0.5).astype(jnp.float32)
    out2 = jax.block_until_ready(dice_loss(pred2, targ2, tile_rows=8, small_limit_rows=0))
    ref2 = jax.block_until_ready(_dice_loss_ref(pred2, targ2))
    assert jnp.allclose(out2, ref2, rtol=1e-4, atol=1e-5), (out2, ref2)

    print("KERNEL_OK")
</pallas_src>

<mosaic_0001>
module attributes {stable_mosaic.version = 11 : i64} {
  func.func @_dice_small_kernel(%arg0: i32, %arg1: memref<2x1x4x128xf32, #tpu.memory_space<vmem>>, %arg2: memref<2x1x4x128xf32, #tpu.memory_space<vmem>>, %arg3: memref<1x1x128xf32, #tpu.memory_space<vmem>>, %arg4: memref<1x1x128xf32, #tpu.memory_space<vmem>>) attributes {dimension_semantics = [#tpu.dimension_semantics<parallel>], iteration_bounds = array<i64: 3>, scalar_prefetch = 0 : i64, scratch_operands = 0 : i64, tpu.core_type = #tpu.core_type<tc>, window_params = [{transform_indices = @transform_0, window_bounds = array<i64: 2, 1, 4, 128>}, {transform_indices = @transform_1, window_bounds = array<i64: 2, 1, 4, 128>}, {transform_indices = @transform_2, window_bounds = array<i64: 1, 1, 128>}, {transform_indices = @transform_3, window_bounds = array<i64: 1, 1, 128>}]} {
    %c0 = arith.constant 0 : index
    %c0_0 = arith.constant 0 : index
    %c0_1 = arith.constant 0 : index
    %c0_2 = arith.constant 0 : index
    %0 = vector.load %arg1[%c0, %c0_0, %c0_1, %c0_2] : memref<2x1x4x128xf32, #tpu.memory_space<vmem>>, vector<2x1x4x128xf32>
    %c0_3 = arith.constant 0 : index
    %c0_4 = arith.constant 0 : index
    %c0_5 = arith.constant 0 : index
    %c0_6 = arith.constant 0 : index
    %1 = vector.load %arg2[%c0_3, %c0_4, %c0_5, %c0_6] : memref<2x1x4x128xf32, #tpu.memory_space<vmem>>, vector<2x1x4x128xf32>
    %2 = arith.mulf %0, %1 : vector<2x1x4x128xf32>
    %cst = arith.constant dense<0.000000e+00> : vector<4x128xf32>
    %3 = vector.multi_reduction <add>, %2, %cst [0, 1] : vector<2x1x4x128xf32> to vector<4x128xf32>
    %cst_7 = arith.constant dense<0.000000e+00> : vector<4x128xf32>
    %4 = vector.multi_reduction <add>, %0, %cst_7 [0, 1] : vector<2x1x4x128xf32> to vector<4x128xf32>
    %cst_8 = arith.constant dense<0.000000e+00> : vector<4x128xf32>
    %5 = vector.multi_reduction <add>, %1, %cst_8 [0, 1] : vector<2x1x4x128xf32> to vector<4x128xf32>
    %6 = arith.addf %4, %5 : vector<4x128xf32>
    %cst_9 = arith.constant dense<0.000000e+00> : vector<128xf32>
    %7 = vector.multi_reduction <add>, %3, %cst_9 [0] : vector<4x128xf32> to vector<128xf32>
    %8 = vector.shape_cast %7 : vector<128xf32> to vector<1x128xf32>
    %9 = vector.shape_cast %8 : vector<1x128xf32> to vector<1x1x128xf32>
    %c0_10 = arith.constant 0 : index
    %c0_11 = arith.constant 0 : index
    %c0_12 = arith.constant 0 : index
    %10 = vector.load %arg3[%c0_10, %c0_11, %c0_12] : memref<1x1x128xf32, #tpu.memory_space<vmem>>, vector<1x1x128xf32>
    tpu.vector_store %arg3[%c0_10, %c0_11, %c0_12], %9 {strides = array<i32>} : memref<1x1x128xf32, #tpu.memory_space<vmem>>, vector<1x1x128xf32>,
    %cst_13 = arith.constant dense<0.000000e+00> : vector<128xf32>
    %11 = vector.multi_reduction <add>, %6, %cst_13 [0] : vector<4x128xf32> to vector<128xf32>
    %12 = vector.shape_cast %11 : vector<128xf32> to vector<1x128xf32>
    %13 = vector.shape_cast %12 : vector<1x128xf32> to vector<1x1x128xf32>
    %c0_14 = arith.constant 0 : index
    %c0_15 = arith.constant 0 : index
    %c0_16 = arith.constant 0 : index
    %14 = vector.load %arg4[%c0_14, %c0_15, %c0_16] : memref<1x1x128xf32, #tpu.memory_space<vmem>>, vector<1x1x128xf32>
    tpu.vector_store %arg4[%c0_14, %c0_15, %c0_16], %13 {strides = array<i32>} : memref<1x1x128xf32, #tpu.memory_space<vmem>>, vector<1x1x128xf32>,
    return
  }
  func.func @transform_0(%arg0: i32) -> (i32, i32, i32, i32) {
    %c1_i32 = arith.constant 1 : i32
    %0 = arith.addi %arg0, %c1_i32 : i32
    %c0_i32 = arith.constant 0 : i32
    %c0_i32_0 = arith.constant 0 : i32
    %c0_i32_1 = arith.constant 0 : i32
    %c0_i32_2 = arith.constant 0 : i32
    return %c0_i32, %0, %c0_i32_0, %c0_i32_1 : i32, i32, i32, i32
  }
  func.func @transform_1(%arg0: i32) -> (i32, i32, i32, i32) {
    %c1_i32 = arith.constant 1 : i32
    %0 = arith.addi %arg0, %c1_i32 : i32
    %c0_i32 = arith.constant 0 : i32
    %c0_i32_0 = arith.constant 0 : i32
    %c0_i32_1 = arith.constant 0 : i32
    %c0_i32_2 = arith.constant 0 : i32
    return %c0_i32, %0, %c0_i32_0, %c0_i32_1 : i32, i32, i32, i32
  }
  func.func @transform_2(%arg0: i32) -> (i32, i32, i32) {
    %c0_i32 = arith.constant 0 : i32
    %c0_i32_0 = arith.constant 0 : i32
    %c0_i32_1 = arith.constant 0 : i32
    return %arg0, %c0_i32, %c0_i32_0 : i32, i32, i32
  }
  func.func @transform_3(%arg0: i32) -> (i32, i32, i32) {
    %c0_i32 = arith.constant 0 : i32
    %c0_i32_0 = arith.constant 0 : i32
    %c0_i32_1 = arith.constant 0 : i32
    return %arg0, %c0_i32, %c0_i32_0 : i32, i32, i32
  }
}

</mosaic_0001>

<bundles_post_ra>
// kernel: tpu_custom_call.1
= control target key start
LH: loop header
LB: loop body
LE: loop exit
PB: predicated region body
PF: predicated region fallthrough
CT: control target
= control target key end

     0   :  { %s1025_s0 = inlined_call_operand.hbm [shape: f32[2,4,4,128], index: 0, kind: input, shape index: {}]   ;;  %s1026_s1 = inlined_call_operand.hbm [shape: f32[2,4,4,128], index: 1, kind: input, shape index: {}]   ;;  %s1027_s2 = inlined_call_operand.hbm [shape: f32[3,1,128], index: 2, kind: output, shape index: {0}]   ;;  %s1028_s3 = inlined_call_operand.hbm [shape: f32[3,1,128], index: 3, kind: output, shape index: {1}]  }
   0x1   :  { %1034 = sst [smem:[#allocation16_spill]] %s1025_s0 }
   0x2   :  { %9 = vsyncpa [#allocation3], 0 }
   0x3   :  { %11 = vsyncpa [#allocation3 + $0x1], 0 }
   0x4   :  { %12 = vsyncpa [#allocation6], 0 }
   0x5   :  { %14 = vsyncpa [#allocation6 + $0x1], 0 }
   0x6   :  { %15 = vsyncpa [#allocation4], 0 }
   0x7   :  { %17 = vsyncpa [#allocation4 + $0x1], 0 }
   0x8   :  { %18 = vsyncpa [#allocation9], 0 }
   0x9   :  { %20 = vsyncpa [#allocation9 + $0x1], 0  ;;  %s740_s12 = smov 0   ;;  %s742_s13 = smov 0  }
   0xa   :  { %s744_s14 = smov 0   ;;  %s746_s15 = smov 0  }
   0xb   :  { %s748_s16 = smov 0   ;;  %s750_s17 = smov 0  }
   0xc   :  { %s752_s18 = smov 0  }
   0xd LB: > { %1035 = sst [smem:[#allocation14_spill]] %s707_s17  ;;  %s774_s19 = sadd.s32 4294967295, %s711_s18   ;;  %s711_s18 = sphi %s752_s18, %s1056_s18   ;;  %s707_s17 = sphi %s750_s17, %s1050_s17   ;;  %s703_s16 = sphi %s748_s16, %s1055_s16   ;;  %s699_s15 = sphi %s746_s15, %s1054_s15   ;;  %s695_s14 = sphi %s744_s14, %s1053_s14   ;;  %s691_s13 = sphi %s742_s13, %s1052_s13   ;;  %s687_s12 = sphi %s740_s12, %s1051_s12  }
   0xe   : > { %s426_s20 = sadd.s32 4294967294, %s711_s18   ;;  %s778_s21 = sadd.s32 1, %s711_s18  }
   0xf   : > { %s35_s22 = sadd.s32 1, %s707_s17  ;;  %s31_s23 = sadd.s32 1, %s778_s21 }
  0x10   : > { %p42_p0 = scmp.ne.s32.totalorder %s707_s17, %s703_s16  ;;  %s32_s24 = ssub.s32 %s778_s21, %s31_s23 }
  0x11   : > { %p43_p1 = scmp.eq.s32.totalorder %s711_s18, 0  ;;  %p33_p2 = scmp.eq.s32.totalorder %s32_s24, 0 }
  0x12   : > { %p48_p3 = scmp.ne.s32.totalorder %s703_s16, %s699_s15  ;;  %p49_p5 = scmp.eq.s32.totalorder %s774_s19, 0 }
  0x13   : > { %p787_p4 = por %p43_p1, %p42_p0  ;;  %s86_s28 = ssub.s32 %s711_s18, %s778_s21 }
  0x14   : > { %s793_s26 = scalar_select %p33_p2, %s707_s17, %s35_s22  }
  0x15   : > { %p795_p6 = por %p49_p5, %p48_p3  ;;  %p87_p7 = scmp.eq.s32.totalorder %s86_s28, 0 }
  0x16   : > { %1037 = sst [smem:[#allocation15_spill]] %s793_s26  ;;  %s89_s29 = sadd.s32 1, %s695_s14 }
  0x17   : > { %s1038_s27 = scalar_select %p795_p6, 1, 0 }
  0x18   : > { %p99_p8 = scmp.ne.s32.totalorder %s695_s14, %s691_s13  ;;  %p100_p9 = scmp.eq.s32.totalorder %s774_s19, 2 }
  0x19   : > { %s806_s30 = scalar_select %p87_p7, %s695_s14, %s89_s29  }
  0x1a   : > { %p808_p10 = por %p100_p9, %p99_p8  ;;  %p105_p11 = scmp.ne.s32.totalorder %s691_s13, %s687_s12 }
  0x1b   : > { %p106_p12 = scmp.eq.s32.totalorder %s426_s20, 2  ;;  %p462_p13 = scmp.lt.s32.totalorder %s711_s18, 3 }
  0x1c   : > { %s1039_s4 = scalar_select %p808_p10, 1, 0 }
  0x1d   : > { %s816_s5 = sand.u32 1, %s707_s17   ;;  %p818_p0 = por %p106_p12, %p105_p11 }
  0x1e   : > { %s1030_s7 = sshll.u32 %s816_s5, 3  ;;  %s430_s8 = sshll.u32 %s711_s18, 6 }
  0x1f   : > { %s1040_s6 = scalar_select %p818_p0, 1, 0 }
  0x20   : > { %s1041_s0 = sld [smem:[#allocation16_spill]]  ;;  %s156_s20 = scalar_lea.vmem [#allocation2], %s1030_s7 }
  0x21   : > { %s163_s22 = sshll.u32 %s156_s20, 4  ;;  %p837_p1 = pnand %p462_p13, %p787_p4  ;;  %s833_s22 = int_to_ptr.vmem [resolvable:$true] %s163_s22 }
  0x22   : > { %s153_s24 = scalar_lea.sflag [#allocation3], %s816_s5 }
  0x23   : > { %p525_p3 = pneg %p837_p1 }
  0x26   : > { %s348_s11 = scalar_lea.hbm %s1041_s0, %s430_s8  ;;  %s528_s10 = scalar_lea.hbm %s1041_s0, 512 }
  0x27   : > { %s829_s15 = scalar_lea.hbm %s348_s11, 64  ;;  %s553_s28 = scalar_lea.hbm %s348_s11, 192 }
  0x28   : > { %p524_p2 = scmp.ne.s32.totalorder %s829_s15, %s553_s28  ;;  %p529_p4 = scmp.lt.u32.totalorder %s829_s15, %s1041_s0 }
  0x29   : > { %p530_p8 = scmp.lt.u32.totalorder %s528_s10, %s553_s28  ;;  %p532_p11 = scmp.lt.u32.totalorder %s553_s28, %s829_s15 }
  0x2a   : > { %p526_p5 = pnand %p525_p3, %p524_p2 }
  0x2b   : > { %p531_p9 = por %p530_p8, %p529_p4 }
  0x2c   : > { %p527_p7 = pneg %p526_p5 }
  0x2d   : > { %p533_p12 = por %p532_p11, %p531_p9 }
  0x2f   : > { %p534_p13 = pnand %p533_p12, %p527_p7 }
  0x31   : > { %537 = shalt.err (!%p534_p13)
}
  0x32   : > { %s538_s11 = scalar_lea.vmem %s833_s22, 128  ;;  %s713_s29 = smov [#allocation2]  }
  0x33   : > { %p539_p2 = scmp.ne.s32.totalorder %s833_s22, %s538_s11  ;;  %s543_s9 = sshll.u32 %s713_s29, 4  ;;  %s544_s9 = int_to_ptr.vmem [resolvable:$false] %s543_s9 }
  0x34   : > { %s545_s25 = scalar_lea.vmem %s544_s9, 256  ;;  %p546_p10 = scmp.lt.s32.totalorder %s833_s22, %s544_s9 }
  0x35   : > { %p541_p5 = pnand %p539_p2, %p525_p3  ;;  %p547_p4 = scmp.lt.s32.totalorder %s545_s25, %s538_s11 }
  0x37   : > { %p542_p0 = pneg %p541_p5  ;;  %p548_p8 = por %p547_p4, %p546_p10 }
  0x39   : > { %p549_p9 = pnand %p548_p8, %p542_p0 }
  0x3b   : > { %552 = shalt.err (!%p549_p9)
}
  0x3c   : > { %s1032_s28 = smov 256   ;;  %s715_s10 = smov 64  }
  0x3d   : > { %s716_s20 = smov 4   ;;  %p433_p10 = scmp.ge.s32.totalorder %s711_s18, 1 }
  0x3e   : > { %451 = dma.hbm_to_vmem [thread:$0]  (!%p837_p1), %s829_s15, 128, %s833_s22, %s153_s24, %s1032_s28, %s715_s10, %s716_s20  }
  0x3f   : > { %p192_p0 = scmp.lt.s32.totalorder %s711_s18, 4  ;;  %s354_s25 = scalar_lea.hbm %s1026_s1, %s430_s8 }
  0x40   : > { %s882_s7 = scalar_lea.hbm %s354_s25, 64  ;;  %s1044_s0 = sshll.u32 %s816_s5, 3 }
  0x41   : > { %p873_p7 = pnand %p433_p10, %p192_p0  ;;  %s177_s26 = scalar_lea.vmem [#allocation5], %s1044_s0 }
  0x42   : > { %s184_s17 = sshll.u32 %s177_s26, 4  ;;  %s174_s15 = scalar_lea.sflag [#allocation6], %s816_s5  ;;  %s886_s17 = int_to_ptr.vmem [resolvable:$true] %s184_s17 }
  0x43   : > { %s584_s22 = scalar_lea.hbm %s354_s25, 192  ;;  %s559_s8 = scalar_lea.hbm %s1026_s1, 512 }
  0x44   : > { %p555_p11 = scmp.ne.s32.totalorder %s882_s7, %s584_s22  ;;  %p560_p2 = scmp.lt.u32.totalorder %s882_s7, %s1026_s1 }
  0x45   : > { %p561_p5 = scmp.lt.u32.totalorder %s559_s8, %s584_s22  ;;  %p563_p8 = scmp.lt.u32.totalorder %s584_s22, %s882_s7 }
  0x46   : > { %p557_p12 = pnand %p555_p11, %p525_p3 }
  0x47   : > { %p562_p4 = por %p561_p5, %p560_p2 }
  0x48   : > { %p558_p13 = pneg %p557_p12 }
  0x49   : > { %p564_p9 = por %p563_p8, %p562_p4 }
  0x4b   : > { %p565_p10 = pnand %p564_p9, %p558_p13 }
  0x4d   : > { %568 = shalt.err (!%p565_p10)
}
  0x4e   : > { %s569_s0 = scalar_lea.vmem %s886_s17, 128  ;;  %s717_s26 = smov [#allocation5]  }
  0x4f   : > { %p570_p0 = scmp.ne.s32.totalorder %s886_s17, %s569_s0  ;;  %s574_s25 = sshll.u32 %s717_s26, 4  ;;  %s575_s25 = int_to_ptr.vmem [resolvable:$false] %s574_s25 }
  0x50   : > { %s576_s28 = scalar_lea.vmem %s575_s25, 256  ;;  %p577_p6 = scmp.lt.s32.totalorder %s886_s17, %s575_s25 }
  0x51   : > { %p572_p11 = pnand %p570_p0, %p525_p3  ;;  %p578_p2 = scmp.lt.s32.totalorder %s576_s28, %s569_s0 }
  0x53   : > { %p573_p12 = pneg %p572_p11  ;;  %p579_p5 = por %p578_p2, %p577_p6 }
  0x55   : > { %p580_p4 = pnand %p579_p5, %p573_p12 }
  0x57   : > { %583 = shalt.err (!%p580_p4)
}
  0x58   : > { %s1045_s22 = smov 256   ;;  %196 = sbr.rel (%p873_p7) target bundleno = 156 (0x9c), region = 28 }
  0x59   : > { %454 = dma.hbm_to_vmem [thread:$0]  (!%p837_p1), %s882_s7, 128, %s886_s17, %s174_s15, %s1045_s22, %s715_s10, %s716_s20  }
  0x5a   : > { %s198_s24 = sand.u32 (!%p873_p7), 1, %s703_s16   ;;  %p1046_p6 = scmp.ne.s32.totalorder (!%p873_p7), %s1038_s27, 0 }
  0x5b   : > { %s434_s29 = sshll.u32 (!%p873_p7), %s198_s24, 3  ;;  %s199_s8 = scalar_lea.sflag (!%p873_p7), [#allocation3], %s198_s24 }
  0x5c   : > { %s202_s9 = scalar_lea.vmem (!%p873_p7), [#allocation2], %s434_s29 }
  0x5f   : > { %670 = dma.done.wait (%p1046_p6), %s199_s8, 128  }
  0x60   : > { %672 = vsyncadd (%p1046_p6), %s199_s8, 4294967168  ;;  %s208_s23 = scalar_lea.sflag [#allocation6], %s198_s24  ;;  %s211_s5 = scalar_lea.vmem [#allocation5], %s434_s29 }
  0x61   : > { %674 = dma.done.wait (%p1046_p6), %s208_s23, 128  }
  0x62   : > { %676 = vsyncadd (%p1046_p6), %s208_s23, 4294967168  ;;  %vm250_vm0 = vcmask 1043456   ;;  %v244_v0 = vld [vmem:[%s202_s9] sm:$0xf]  ;;  %v245_v1 = vld [vmem:[%s202_s9 + $0x4] sm:$0xf] }
  0x63   : > { %v246_v2 = vld [vmem:[%s211_s5] sm:$0xf]  ;;  %v247_v3 = vld [vmem:[%s211_s5 + $0x4] sm:$0xf]  ;;  %v254_v5 = vsel %vm250_vm0, %v244_v0, 0.0  ;;  %v255_v6 = vsel %vm250_vm0, %v245_v1, 0.0 }
  0x64   : > { %v248_v4 = vmul.f32 %v246_v2, %v244_v0  ;;  %v257_v7 = vsel %vm250_vm0, %v246_v2, 0.0  ;;  %v249_v8 = vmul.f32 %v247_v3, %v245_v1  ;;  %v256_v9 = vadd.f32 %v255_v6, %v254_v5  ;;  %s936_s17 = sand.u32 1, %s691_s13   ;;  %s436_s11 = sshll.u32 %s774_s19, 4 }
  0x65   : > { %v258_v10 = vsel %vm250_vm0, %v247_v3, 0.0  ;;  %s235_s27 = scalar_lea.vmem [#allocation7], %s936_s17  ;;  %s241_s10 = scalar_lea.vmem [#allocation8], %s936_s17 }
  0x66   : > { %v251_v11 = vsel %vm250_vm0, %v248_v4, 0.0  ;;  %v259_v12 = vadd.f32 %v258_v10, %v257_v7  ;;  %v252_v13 = vsel %vm250_vm0, %v249_v8, 0.0  ;;  %s294_s7 = sshll.u32 %s235_s27, 4  ;;  %s307_s20 = sshll.u32 %s241_s10, 4  ;;  %s941_s7 = int_to_ptr.vmem [resolvable:$true] %s294_s7  ;;  %s943_s20 = int_to_ptr.vmem [resolvable:$true] %s307_s20 }
  0x67   : > { %v253_v14 = vadd.f32 %v252_v13, %v251_v11  ;;  %s948_s26 = scalar_lea.hbm %s1027_s2, %s436_s11  ;;  %s953_s19 = scalar_lea.hbm %s1028_s3, %s436_s11 }
  0x68   : > { %v260_v15 = vadd.f32 %v259_v12, %v256_v9  ;;  %s278_s22 = scalar_lea.sflag [#allocation4], %s936_s17  ;;  %s585_s24 = scalar_lea.vmem %s941_s7, 16 }
  0x69   : > { %v261_v16 = vsel %vm250_vm0, %v253_v14, 0.0  ;;  %p586_p1 = scmp.ne.s32.totalorder %s941_s7, %s585_s24  ;;  %p1047_p3 = scmp.ne.s32.totalorder %s1039_s4, 0 }
  0x6a   : > { %v269_v17 = vsel %vm250_vm0, %v260_v15, 0.0  ;;  %v262_v18 = vrot.slane %v261_v16, 4  ;;  %s718_s29 = smov [#allocation7]  }
  0x6b   : > { %v270_v19 = vrot.slane %v269_v17, 4  ;;  %p587_p7 = pnand %p586_p1, %p1047_p3  ;;  %s589_s8 = sshll.u32 %s718_s29, 4  ;;  %s590_s8 = int_to_ptr.vmem [resolvable:$false] %s589_s8 }
  0x6c   : > { %v263_v20 = vadd.f32 %v262_v18, %v261_v16  ;;  %s591_s9 = scalar_lea.vmem %s590_s8, 32  ;;  %p592_p8 = scmp.lt.s32.totalorder %s941_s7, %s590_s8 }
  0x6d   : > { %v271_v21 = vadd.f32 %v270_v19, %v269_v17  ;;  %p588_p13 = pneg %p587_p7  ;;  %p593_p9 = scmp.lt.s32.totalorder %s591_s9, %s585_s24 }
  0x6e   : > { %v264_v22 = vrot.slane %v263_v20, 2 }
  0x6f   : > { %v272_v23 = vrot.slane %v271_v21, 2  ;;  %p594_p10 = por %p593_p9, %p592_p8 }
  0x70   : > { %v265_v24 = vadd.f32 %v264_v22, %v263_v20 }
  0x71   : > { %v273_v25 = vadd.f32 %v272_v23, %v271_v21  ;;  %p595_p0 = pnand %p594_p10, %p588_p13 }
  0x72   : > { %v266_v26 = vrot.slane %v265_v24, 1 }
  0x73   : > { %v274_v27 = vrot.slane %v273_v25, 1 }
  0x74   : > { %v267_v28 = vadd.f32 %v266_v26, %v265_v24 }
  0x75   : > { %v275_v29 = vadd.f32 %v274_v27, %v273_v25 }
  0x76   : > { %268 = vst [vmem:[%s235_s27] sm:$0x1] %v267_v28 }
  0x77   : > { %276 = vst [vmem:[%s241_s10] sm:$0x1] %v275_v29 }
  0x78   : > { %598 = shalt.err (!%p595_p0)
}
  0x79   : > { %s599_s23 = scalar_lea.hbm %s948_s26, 16  ;;  %s603_s10 = scalar_lea.hbm %s1027_s2, 48 }
  0x7a   : > { %p600_p11 = scmp.ne.s32.totalorder %s948_s26, %s599_s23  ;;  %p604_p5 = scmp.lt.u32.totalorder %s948_s26, %s1027_s2 }
  0x7b   : > { %p605_p4 = scmp.lt.u32.totalorder %s603_s10, %s599_s23  ;;  %p607_p1 = scmp.lt.u32.totalorder %s599_s23, %s948_s26 }
  0x7c   : > { %p601_p12 = pnand %p600_p11, %p1047_p3 }
  0x7d   : > { %p606_p6 = por %p605_p4, %p604_p5 }
  0x7e   : > { %p602_p2 = pneg %p601_p12 }
  0x7f   : > { %p608_p7 = por %p607_p1, %p606_p6 }
  0x81   : > { %p609_p13 = pnand %p608_p7, %p602_p2 }
  0x83   : > { %612 = shalt.err (!%p609_p13)
}
  0x84   : > { %444 = dma.vmem_to_hbm [thread:$0]  (%p1047_p3), %s941_s7, 16, %s948_s26, %s278_s22  }
  0x85   : > { %s282_s0 = scalar_lea.sflag [#allocation9], %s936_s17  ;;  %s613_s25 = scalar_lea.vmem %s943_s20, 16 }
  0x86   : > { %p614_p8 = scmp.ne.s32.totalorder %s943_s20, %s613_s25  ;;  %s719_s28 = smov [#allocation8]  }
  0x87   : > { %s617_s24 = sshll.u32 %s719_s28, 4  ;;  %s618_s24 = int_to_ptr.vmem [resolvable:$false] %s617_s24 }
  0x88   : > { %p615_p9 = pnand %p614_p8, %p1047_p3  ;;  %s619_s29 = scalar_lea.vmem %s618_s24, 32 }
  0x89   : > { %p620_p0 = scmp.lt.s32.totalorder %s943_s20, %s618_s24  ;;  %p621_p11 = scmp.lt.s32.totalorder %s619_s29, %s613_s25 }
  0x8a   : > { %p616_p10 = pneg %p615_p9 }
  0x8b   : > { %p622_p12 = por %p621_p11, %p620_p0 }
  0x8d   : > { %p623_p2 = pnand %p622_p12, %p616_p10 }
  0x8f   : > { %626 = shalt.err (!%p623_p2)
}
  0x90   : > { %s627_s17 = scalar_lea.hbm %s953_s19, 16  ;;  %s631_s22 = scalar_lea.hbm %s1028_s3, 48 }
  0x91   : > { %p628_p5 = scmp.ne.s32.totalorder %s953_s19, %s627_s17  ;;  %p632_p1 = scmp.lt.u32.totalorder %s953_s19, %s1028_s3 }
  0x92   : > { %p633_p7 = scmp.lt.u32.totalorder %s631_s22, %s627_s17  ;;  %p635_p8 = scmp.lt.u32.totalorder %s627_s17, %s953_s19 }
  0x93   : > { %p629_p4 = pnand %p628_p5, %p1047_p3 }
  0x94   : > { %p634_p13 = por %p633_p7, %p632_p1 }
  0x95   : > { %p630_p6 = pneg %p629_p4 }
  0x96   : > { %p636_p9 = por %p635_p8, %p634_p13 }
  0x98   : > { %p637_p10 = pnand %p636_p9, %p630_p6 }
  0x9a   : > { %640 = shalt.err (!%p637_p10)
}
  0x9b   : > { %445 = dma.vmem_to_hbm [thread:$0]  (%p1047_p3), %s943_s20, 16, %s953_s19, %s282_s0  }
  0x9c PF: > { %p463_p0 = scmp.ge.s32.totalorder %s711_s18, 2  ;;  %s319_s23 = sand.u32 1, %s687_s12  }
  0x9d   : > { %p1048_p11 = scmp.ne.s32.totalorder %s1040_s6, 0  ;;  %s320_s5 = scalar_lea.sflag [#allocation4], %s319_s23 }
  0x9f   : > { %p456_p12 = pnand %p463_p0, %p1048_p11 }
  0xa1   : > { %678 = dma.done.wait (!%p456_p12), %s320_s5, 16  }
  0xa2   : > { %680 = vsyncadd (!%p456_p12), %s320_s5, 4294967280  ;;  %s328_s27 = scalar_lea.sflag [#allocation9], %s319_s23 }
  0xa3   : > { %682 = dma.done.wait (!%p456_p12), %s328_s27, 16  }
  0xa4   : > { %684 = vsyncadd (!%p456_p12), %s328_s27, 4294967280  ;;  %s1049_s4 = sld [smem:[#allocation14_spill]]  ;;  %s1050_s17 = sld [smem:[#allocation15_spill]] }
  0xa5   : > { %p23_p3 = scmp.ge.s32.totalorder %s778_s21, 5   ;;  %s1051_s12 = smov %s691_s13 }
  0xa6   : > { %s1052_s13 = smov %s695_s14  ;;  %s1053_s14 = smov %s806_s30 }
  0xa7   : > { %s1054_s15 = smov %s703_s16  ;;  %s1056_s18 = smov %s778_s21 }
  0xa8   :  { %25 = sbr.rel (!%p23_p3) target bundleno = 13 (0xd), region = 103 }
  0xaa   : > { %s1055_s16 = smov %s1049_s4 }
  0xaf   :  { %332 = vsyncpa [#allocation3], 1 }
  0xb0   :  { %334 = vsyncpa [#allocation3 + $0x1], 1 }
  0xb1   :  { %335 = vsyncpa [#allocation6], 1 }
  0xb2   :  { %337 = vsyncpa [#allocation6 + $0x1], 1 }
  0xb3   :  { %338 = vsyncpa [#allocation4], 1 }
  0xb4   :  { %340 = vsyncpa [#allocation4 + $0x1], 1 }
  0xb5   :  { %341 = vsyncpa [#allocation9], 1 }
  0xb6   :  { %343 = vsyncpa [#allocation9 + $0x1], 1 }

</bundles_post_ra>
